<compile_context>
chip_gen: v7x
topology: tpu7x:2x2x1
jax: 0.10.0
libtpu: 0.0.40
codegen_flags: <defaults>
</compile_context>

<pallas_src>
import jax
import jax.numpy as jnp
from jax import lax
from jax.experimental import pallas as pl
from jax.experimental.pallas import tpu as pltpu


def _product_loss_partial_kernel(x_ref, out_ref):
    """One grid step: partial sum of (p0*p1 - t0*t1)**2 over its block.

    x_ref block: (4, tb, sub, 128) with rows [pred0, pred1, targ0, targ1].
    out_ref block: (1, sub, 128) f32 partial sums (lane-dense).
    """
    tb = x_ref.shape[1]
    sub = x_ref.shape[2]

    def body(i, acc):
        p0 = x_ref[0, i, :, :].astype(jnp.float32)
        p1 = x_ref[1, i, :, :].astype(jnp.float32)
        t0 = x_ref[2, i, :, :].astype(jnp.float32)
        t1 = x_ref[3, i, :, :].astype(jnp.float32)
        d = p0 * p1 - t0 * t1
        return acc + d * d

    unroll = max(1, min(8, tb))
    acc = lax.fori_loop(0, tb, body, jnp.zeros((sub, 128), jnp.float32),
                        unroll=unroll)
    out_ref[...] = acc[None]


def product_loss(predictions, targets, *, block_units=256, use_pallas=None):
    """mean((pred[:,0]*pred[:,1] - targ[:,0]*targ[:,1])**2)."""
    assert predictions.shape == targets.shape
    assert predictions.ndim == 2 and predictions.shape[1] >= 2
    n = predictions.shape[0]
    dtype = jnp.result_type(predictions.dtype, targets.dtype)

    if use_pallas is None:
        # The wrapper pack is an extra HBM round trip, so the Pallas path only
        # pays off for large batches; default to fused XLA below this size.
        use_pallas = n >= (1 << 18)

    if not use_pallas:
        p0 = predictions[:, 0].astype(jnp.float32)
        p1 = predictions[:, 1].astype(jnp.float32)
        t0 = targets[:, 0].astype(jnp.float32)
        t1 = targets[:, 1].astype(jnp.float32)
        d = p0 * p1 - t0 * t1
        return jnp.mean(d * d)

    # dtype-aware native tile: bf16 -> (16,128), f32 -> (8,128).
    sub = 16 if dtype == jnp.bfloat16 else 8
    unit = sub * 128

    n_units = -(-n // unit)                       # ceil-div
    num_blocks = -(-n_units // block_units)       # grid size
    tb = -(-n_units // num_blocks)                # balanced units per block
    n_pad = num_blocks * tb * unit

    # --- ONE packed build (layout plumbing only; single fused XLA pass) ---
    cols = jnp.stack(
        [predictions[:, 0], predictions[:, 1], targets[:, 0], targets[:, 1]],
        axis=0,
    ).astype(dtype)                               # (4, N)
    cols = jnp.pad(cols, ((0, 0), (0, n_pad - n)))  # zeros add 0 to the loss
    packed = cols.reshape(4, num_blocks * tb, sub, 128)

    itemsize = jnp.dtype(dtype).itemsize
    cost = pl.CostEstimate(
        flops=4 * n_pad,
        transcendentals=0,
        bytes_accessed=4 * n_pad * itemsize + num_blocks * unit * 4,
    )

    partials = pl.pallas_call(
        _product_loss_partial_kernel,
        out_shape=jax.ShapeDtypeStruct((num_blocks, sub, 128), jnp.float32),
        grid_spec=pltpu.PrefetchScalarGridSpec(
            num_scalar_prefetch=0,
            grid=(num_blocks,),
            in_specs=[pl.BlockSpec((4, tb, sub, 128),
                                   lambda i: (0, i, 0, 0))],
            out_specs=pl.BlockSpec((1, sub, 128), lambda i: (i, 0, 0)),
        ),
        compiler_params=pltpu.CompilerParams(
            dimension_semantics=("parallel",),
            vmem_limit_bytes=32 << 20,
        ),
        cost_estimate=cost,
    )(packed)

    # Tiny epilogue: final cross-lane reduce + divide by the true N (fused XLA).
    return jnp.sum(partials) / jnp.float32(n)


def product_loss_ref(predictions, targets):
    pred_product = predictions[:, 0] * predictions[:, 1]
    target_product = targets[:, 0] * targets[:, 1]
    return jnp.mean((pred_product - target_product) ** 2)


if __name__ == "__main__":
    key = jax.random.PRNGKey(0)
    k0, k1, k2, k3, k4, k5 = jax.random.split(key, 6)

    # Small shapes consistent with the module's (batch, features>=2) inputs.
    N, C = 300, 3
    predictions = jax.random.normal(k0, (N, C), dtype=jnp.float32)
    targets = jax.random.normal(k1, (N, C), dtype=jnp.float32)

    loss = product_loss(predictions, targets, use_pallas=True)
    loss = jax.block_until_ready(loss)
    ref = product_loss_ref(predictions, targets)
    assert jnp.allclose(loss, ref, rtol=1e-5, atol=1e-5), (loss, ref)

    # Multi-block grid with tail padding (tiny block_units only for the test;
    # defaults use ~1 MiB-per-block streaming for performance).
    N2 = 5 * 1024 + 37
    predictions2 = jax.random.normal(k2, (N2, C), dtype=jnp.float32)
    targets2 = jax.random.normal(k3, (N2, C), dtype=jnp.float32)
    loss2 = product_loss(predictions2, targets2, block_units=2, use_pallas=True)
    loss2 = jax.block_until_ready(loss2)
    ref2 = product_loss_ref(predictions2, targets2)
    assert jnp.allclose(loss2, ref2, rtol=1e-5, atol=1e-5), (loss2, ref2)

    # bf16 path: exercises the (16,128) native tile; kernel upcasts to f32,
    # so compare against an f32 reference computed from the bf16 values.
    N3 = 3 * 2048 + 100
    predictions3 = jax.random.normal(k4, (N3, C), dtype=jnp.bfloat16)
    targets3 = jax.random.normal(k5, (N3, C), dtype=jnp.bfloat16)
    loss3 = product_loss(predictions3, targets3, block_units=2, use_pallas=True)
    loss3 = jax.block_until_ready(loss3)
    ref3 = product_loss_ref(predictions3.astype(jnp.float32),
                            targets3.astype(jnp.float32))
    assert jnp.allclose(loss3, ref3, rtol=1e-4, atol=1e-5), (loss3, ref3)

    print("KERNEL_OK")
</pallas_src>

<mosaic_0001>
module attributes {stable_mosaic.version = 11 : i64} {
  func.func @_product_loss_partial_kernel(%arg0: i32, %arg1: memref<4x1x8x128xf32, #tpu.memory_space<vmem>>, %arg2: memref<1x8x128xf32, #tpu.memory_space<vmem>>) attributes {dimension_semantics = [#tpu.dimension_semantics<parallel>], iteration_bounds = array<i64: 1>, scalar_prefetch = 0 : i64, scratch_operands = 0 : i64, tpu.core_type = #tpu.core_type<tc>, window_params = [{transform_indices = @transform_0, window_bounds = array<i64: 4, 1, 8, 128>}, {transform_indices = @transform_1, window_bounds = array<i64: 1, 8, 128>}]} {
    %cst = arith.constant 0.000000e+00 : f32
    %0 = vector.broadcast %cst : f32 to vector<8x128xf32>
    %c0_i32 = arith.constant 0 : i32
    %c0 = arith.constant 0 : index
    %1 = arith.index_cast %c0_i32 : i32 to index
    %c0_0 = arith.constant 0 : index
    %c0_1 = arith.constant 0 : index
    %2 = vector.load %arg1[%c0, %1, %c0_0, %c0_1] : memref<4x1x8x128xf32, #tpu.memory_space<vmem>>, vector<1x1x8x128xf32>
    %3 = vector.shape_cast %2 : vector<1x1x8x128xf32> to vector<8x128xf32>
    %c1 = arith.constant 1 : index
    %4 = arith.index_cast %c0_i32 : i32 to index
    %c0_2 = arith.constant 0 : index
    %c0_3 = arith.constant 0 : index
    %5 = vector.load %arg1[%c1, %4, %c0_2, %c0_3] : memref<4x1x8x128xf32, #tpu.memory_space<vmem>>, vector<1x1x8x128xf32>
    %6 = vector.shape_cast %5 : vector<1x1x8x128xf32> to vector<8x128xf32>
    %c2 = arith.constant 2 : index
    %7 = arith.index_cast %c0_i32 : i32 to index
    %c0_4 = arith.constant 0 : index
    %c0_5 = arith.constant 0 : index
    %8 = vector.load %arg1[%c2, %7, %c0_4, %c0_5] : memref<4x1x8x128xf32, #tpu.memory_space<vmem>>, vector<1x1x8x128xf32>
    %9 = vector.shape_cast %8 : vector<1x1x8x128xf32> to vector<8x128xf32>
    %c3 = arith.constant 3 : index
    %10 = arith.index_cast %c0_i32 : i32 to index
    %c0_6 = arith.constant 0 : index
    %c0_7 = arith.constant 0 : index
    %11 = vector.load %arg1[%c3, %10, %c0_6, %c0_7] : memref<4x1x8x128xf32, #tpu.memory_space<vmem>>, vector<1x1x8x128xf32>
    %12 = vector.shape_cast %11 : vector<1x1x8x128xf32> to vector<8x128xf32>
    %13 = arith.mulf %3, %6 : vector<8x128xf32>
    %14 = arith.mulf %9, %12 : vector<8x128xf32>
    %15 = arith.subf %13, %14 : vector<8x128xf32>
    %16 = arith.mulf %15, %15 : vector<8x128xf32>
    %17 = arith.addf %0, %16 : vector<8x128xf32>
    %c1_i32 = arith.constant 1 : i32
    %18 = vector.shape_cast %17 : vector<8x128xf32> to vector<1x8x128xf32>
    %c0_8 = arith.constant 0 : index
    %c0_9 = arith.constant 0 : index
    %c0_10 = arith.constant 0 : index
    %19 = vector.load %arg2[%c0_8, %c0_9, %c0_10] : memref<1x8x128xf32, #tpu.memory_space<vmem>>, vector<1x8x128xf32>
    tpu.vector_store %arg2[%c0_8, %c0_9, %c0_10], %18 {strides = array<i32>} : memref<1x8x128xf32, #tpu.memory_space<vmem>>, vector<1x8x128xf32>,
    return
  }
  func.func @transform_0(%arg0: i32) -> (i32, i32, i32, i32) {
    %c0_i32 = arith.constant 0 : i32
    %c0_i32_0 = arith.constant 0 : i32
    %c0_i32_1 = arith.constant 0 : i32
    %c0_i32_2 = arith.constant 0 : i32
    return %c0_i32, %arg0, %c0_i32_0, %c0_i32_1 : i32, i32, i32, i32
  }
  func.func @transform_1(%arg0: i32) -> (i32, i32, i32) {
    %c0_i32 = arith.constant 0 : i32
    %c0_i32_0 = arith.constant 0 : i32
    %c0_i32_1 = arith.constant 0 : i32
    return %arg0, %c0_i32, %c0_i32_0 : i32, i32, i32
  }
}

</mosaic_0001>

<bundles_post_ra>
// kernel: tpu_custom_call.1
= control target key start
LH: loop header
LB: loop body
LE: loop exit
PB: predicated region body
PF: predicated region fallthrough
CT: control target
= control target key end

     0   :  { %6 = vsyncpa [#allocation3], 0  ;;  %s141_s0 = inlined_call_operand.hbm [shape: f32[4,1,8,128], index: 0, kind: input, shape index: {}]   ;;  %s142_s1 = inlined_call_operand.hbm [shape: f32[1,8,128], index: 1, kind: output, shape index: {}]  }
   0x1   :  { %7 = vsyncpa [#allocation4], 0  ;;  %s103_s6 = smov [#allocation2]   ;;  %s55_s10 = scalar_lea.hbm %s141_s0, 512 }
   0x2   :  { %s13_s7 = sshll.u32 %s103_s6, 4  ;;  %p56_p0 = scmp.ne.s32.totalorder %s141_s0, %s55_s10  ;;  %s14_s7 = int_to_ptr.vmem [resolvable:$true] %s13_s7 }
   0x3   :  { %p59_p1 = scmp.lt.u32.totalorder %s55_s10, %s141_s0 }
   0x5   :  { %p61_p2 = pnand %p59_p1, %p56_p0 }
   0x7   :  { %64 = shalt.err (!%p61_p2)
}
   0x8   :  { %s65_s15 = scalar_lea.vmem %s14_s7, 512  ;;  %p70_p4 = scmp.lt.s32.totalorder %s14_s7, %s14_s7 }
   0x9   :  { %p66_p3 = scmp.ne.s32.totalorder %s14_s7, %s65_s15  ;;  %p71_p5 = scmp.lt.s32.totalorder %s65_s15, %s65_s15 }
   0xb   :  { %p72_p6 = por %p71_p5, %p70_p4 }
   0xd   :  { %p73_p7 = pnand %p72_p6, %p66_p3 }
   0xf   :  { %76 = shalt.err (!%p73_p7)
}
  0x10   :  { %s104_s16 = smov 128   ;;  %s105_s17 = smov 8  }
  0x11   :  { %19 = dma.hbm_to_vmem [thread:$0]  %s141_s0, 512, %s14_s7, [#allocation3], %s104_s16, %s104_s16, %s105_s17  }
  0x12   :  { %99 = dma.done.wait [#allocation3], 512  }
  0x13   :  { %100 = vsyncadd [#allocation3], 4294966784  ;;  %v23_v0 = vld [vmem:[#allocation2] sm:$0xff]  ;;  %v25_v1 = vld [vmem:[#allocation2 + $0x8] sm:$0xff]  ;;  %s106_s20 = smov [#allocation5]  }
  0x14   :  { %v27_v2 = vld [vmem:[#allocation2 + $0x10] sm:$0xff]  ;;  %v29_v3 = vld [vmem:[#allocation2 + $0x18] sm:$0xff]  ;;  %v30_v4 = vmul.f32 %v25_v1, %v23_v0  ;;  %s42_s21 = sshll.u32 %s106_s20, 4  ;;  %s43_s21 = int_to_ptr.vmem [resolvable:$true] %s42_s21 }
  0x15   :  { %v31_v5 = vmul.f32 %v29_v3, %v27_v2  ;;  %s77_s22 = scalar_lea.vmem %s43_s21, 128  ;;  %p82_p9 = scmp.lt.s32.totalorder %s43_s21, %s43_s21 }
  0x16   :  { %p78_p8 = scmp.ne.s32.totalorder %s43_s21, %s77_s22  ;;  %p83_p10 = scmp.lt.s32.totalorder %s77_s22, %s77_s22 }
  0x17   :  { %v32_v6 = vsub.f32 %v30_v4, %v31_v5 }
  0x18   :  { %p84_p11 = por %p83_p10, %p82_p9 }
  0x19   :  { %v33_v7 = vmul.f32 %v32_v6, %v32_v6 }
  0x1a   :  { %p85_p12 = pnand %p84_p11, %p78_p8 }
  0x1b   :  { %35 = vst [vmem:[#allocation5] sm:$0xff] %v33_v7 }
  0x1c   :  { %88 = shalt.err (!%p85_p12)
}
  0x1d   :  { %s89_s24 = scalar_lea.hbm %s142_s1, 128 }
  0x1e   :  { %p90_p13 = scmp.ne.s32.totalorder %s142_s1, %s89_s24  ;;  %p93_p0 = scmp.lt.u32.totalorder %s89_s24, %s142_s1 }
  0x20   :  { %p95_p1 = pnand %p93_p0, %p90_p13 }
  0x22   :  { %98 = shalt.err (!%p95_p1)
}
  0x23   :  { %45 = dma.vmem_to_hbm [thread:$0]  %s43_s21, 128, %s142_s1, [#allocation4]  }
  0x24   :  { %101 = dma.done.wait [#allocation4], 128  }
  0x25   :  { %102 = vsyncadd [#allocation4], 4294967168 }
  0x26   :  { %49 = vsyncpa [#allocation3], 1 }
  0x27   :  { %50 = vsyncpa [#allocation4], 1 }

</bundles_post_ra>
